<compile_context>
chip_gen: v6e
topology: v6e:2x2x1
jax: 0.10.0
libtpu: 0.0.40
codegen_flags: <defaults>
</compile_context>

<pallas_src>
import functools

import jax
import jax.numpy as jnp
from jax.experimental import pallas as pl
from jax.experimental.pallas import tpu as pltpu


def _round_up(v, m):
    return (v + m - 1) // m * m


# ----------------------------------------------------------------------------
# Fused kernel: one (batch, row-band) step.
# ----------------------------------------------------------------------------
def _conv_dw_kernel(x_ref, w1_ref, s1_ref, w2_ref, s2_ref, o_ref, p_ref, *,
                    KH, KW, Wp, OW, RB, stride, cin_p):
    # x_ref : (Cin_p, L_in)           flattened (rows * Wp) padded input band
    # w1_ref: (Cmid_p, KH*KW*Cin_p)   3x3 weights, BN1 scale folded in
    # s1_ref: (Cmid_p, 1)             BN1 shift (+ folded conv bias), f32
    # w2_ref: (Cout, Cmid_p)          1x1 weights, BN2 scale folded in
    # s2_ref: (Cout, 1)               BN2 shift (+ folded conv bias), f32
    # o_ref : (Cout, RB, OW)          output rows of this band (exact, no junk)
    # p_ref : (KH*KW*Cin_p, RB*Wp)    scratch: stacked (im2col-in-VMEM) operand
    if stride == 1:
        L = RB * Wp
        # Build the stacked operand: tap t = (kh, kw) occupies rows
        # [t*Cin_p, (t+1)*Cin_p) and holds the input shifted by kh*Wp + kw lanes.
        for kh in range(KH):
            for kw in range(KW):
                t = kh * KW + kw
                off = kh * Wp + kw
                p_ref[t * cin_p:(t + 1) * cin_p, :] = x_ref[:, off:off + L]
        # conv3x3 as ONE GEMM with contraction depth KH*KW*Cin_p.
        acc = jnp.dot(w1_ref[...], p_ref[...],
                      preferred_element_type=jnp.float32)            # (Cmid_p, L)
        # BN1 (folded) + ReLU
        h = jnp.maximum(acc + s1_ref[...], 0.0)
        # 1x1 conv (+ BN2 folded) + ReLU, native compute dtype on the MXU.
        y = jnp.dot(w2_ref[...], h.astype(w2_ref.dtype),
                    preferred_element_type=jnp.float32)               # (Cout, L)
        y = jnp.maximum(y + s2_ref[...], 0.0).astype(o_ref.dtype)
        # Compact while storing: drop the KW-1 junk columns per flat row so HBM
        # only ever sees the exact (Cout, RB, OW) output.
        for r in range(RB):
            o_ref[:, r, :] = y[:, r * Wp:r * Wp + OW]
    else:
        # TODO(synk): generic strided path — exact work (no stride^2 waste) via
        # per-output-row GEMMs, but slower than the stride-1 fast path above.
        for r in range(RB):
            for kh in range(KH):
                for kw in range(KW):
                    t = kh * KW + kw
                    start = (r * stride + kh) * Wp + kw
                    p_ref[t * cin_p:(t + 1) * cin_p, 0:OW] = (
                        x_ref[:, pl.ds(start, OW, stride=stride)])
            acc = jnp.dot(w1_ref[...], p_ref[:, 0:OW],
                          preferred_element_type=jnp.float32)
            h = jnp.maximum(acc + s1_ref[...], 0.0)
            y = jnp.dot(w2_ref[...], h.astype(w2_ref.dtype),
                        preferred_element_type=jnp.float32)
            o_ref[:, r, :] = jnp.maximum(y + s2_ref[...], 0.0).astype(o_ref.dtype)


# ----------------------------------------------------------------------------
# Wrapper: folds BN, builds the per-band padded/flattened input, runs the grid.
# ----------------------------------------------------------------------------
def conv_dw_forward(x, w_dw, w_pw, bn1, bn2, *, stride=1, padding=1,
                    b_dw=None, b_pw=None, eps=1e-5, compute_dtype=None,
                    out_dtype=None, band_rows=None):
    # x: (N, Cin, H, W) NCHW; w_dw: (Cmid=Cin, Cin, KH, KW); w_pw: (Cout, Cmid, 1, 1)
    N, Cin, H, W = x.shape
    Cmid, _, KH, KW = w_dw.shape
    Cout = w_pw.shape[0]
    gamma1, beta1, mean1, var1 = bn1
    gamma2, beta2, mean2, var2 = bn2

    cdt = jnp.dtype(compute_dtype) if compute_dtype is not None else x.dtype
    odt = jnp.dtype(out_dtype) if out_dtype is not None else x.dtype

    # --- fold BatchNorm (inference / running stats) into weights & shifts ----
    sc1 = gamma1 / jnp.sqrt(var1 + eps)                      # (Cmid,)
    shift1 = beta1 - mean1 * sc1
    if b_dw is not None:
        shift1 = shift1 + b_dw * sc1
    sc2 = gamma2 / jnp.sqrt(var2 + eps)                      # (Cout,)
    shift2 = beta2 - mean2 * sc2
    if b_pw is not None:
        shift2 = shift2 + b_pw * sc2

    # --- pad channel counts to the 8-sublane granularity (zero weights) ------
    Cin_p = _round_up(Cin, 8)
    Cmid_p = _round_up(Cmid, 8)

    # (Cmid, Cin, KH, KW) -> (Cmid_p, KH*KW*Cin_p); column order matches the
    # kernel's stacking: (kh*KW + kw)*Cin_p + cin.
    w1 = (w_dw * sc1[:, None, None, None]).transpose(0, 2, 3, 1)   # (Cmid,KH,KW,Cin)
    w1 = jnp.pad(w1, ((0, Cmid_p - Cmid), (0, 0), (0, 0), (0, Cin_p - Cin)))
    w1 = w1.reshape(Cmid_p, KH * KW * Cin_p).astype(cdt)
    w2 = (w_pw[:, :, 0, 0] * sc2[:, None])                         # (Cout, Cmid)
    w2 = jnp.pad(w2, ((0, 0), (0, Cmid_p - Cmid))).astype(cdt)
    s1 = jnp.pad(shift1, (0, Cmid_p - Cmid)).reshape(Cmid_p, 1).astype(jnp.float32)
    s2 = shift2.reshape(Cout, 1).astype(jnp.float32)

    # --- output extents & row-band tiling -------------------------------------
    pad = padding
    Wp = W + 2 * pad
    OH = (H + 2 * pad - KH) // stride + 1
    OW = (W + 2 * pad - KW) // stride + 1
    if band_rows is None:
        band_rows = max(8, min(128, ((2048 // Wp) // 8) * 8))
    RB = min(band_rows, OH)
    if RB < OH:
        RB = max(8, (RB // 8) * 8)          # multiple of 8 unless whole image
    nb = -(-OH // RB)
    OH_pad = nb * RB
    # +1 extra row so every stride-1 tap slice (offset + RB*Wp) stays in bounds
    RB_in = (RB - 1) * stride + KH + 1
    L_in = RB_in * Wp

    # --- build per-band, zero-padded, channel-padded, flattened input --------
    # One fused XLA producer pass (slices + pads + concat); the kernel reads it
    # exactly once.  See header TODO about fully in-kernel padding via DMA.
    bands = []
    for b in range(nb):
        r0 = b * RB * stride - pad
        r1 = r0 + RB_in
        lo = min(max(r0, 0), H)
        hi = min(max(r1, 0), H)
        top = min(max(-r0, 0), RB_in)
        bot = RB_in - top - (hi - lo)
        band = x[:, :, lo:hi, :]
        band = jnp.pad(band, ((0, 0), (0, Cin_p - Cin), (top, bot), (pad, pad)))
        bands.append(band)
    xb = jnp.stack(bands, axis=1).astype(cdt)        # (N, nb, Cin_p, RB_in, Wp)
    xb = xb.reshape(N, nb, Cin_p, L_in)              # contiguous (free) flatten

    kernel = functools.partial(_conv_dw_kernel, KH=KH, KW=KW, Wp=Wp, OW=OW,
                               RB=RB, stride=stride, cin_p=Cin_p)

    # VMEM budget: leave headroom; v7x only has 64 MiB physical per TensorCore.
    try:
        vmem_cap = int(pltpu.get_tpu_info().vmem_capacity_bytes)
    except Exception:
        vmem_cap = 128 * 1024 * 1024
    vmem_limit = int(min(100 * 1024 * 1024, (vmem_cap * 3) // 4))

    out = pl.pallas_call(
        kernel,
        out_shape=jax.ShapeDtypeStruct((N, Cout, OH_pad, OW), odt),
        grid_spec=pltpu.PrefetchScalarGridSpec(
            num_scalar_prefetch=0,
            grid=(N, nb),
            in_specs=[
                pl.BlockSpec((None, None, Cin_p, L_in), lambda n, b: (n, b, 0, 0)),
                # Constant operands: same block every step (Pallas only re-DMAs
                # when the block index changes).
                # TODO(synk): pipeline_mode=pl.Buffered(1) would also drop their
                # second VMEM buffer.
                pl.BlockSpec((Cmid_p, KH * KW * Cin_p), lambda n, b: (0, 0)),
                pl.BlockSpec((Cmid_p, 1), lambda n, b: (0, 0)),
                pl.BlockSpec((Cout, Cmid_p), lambda n, b: (0, 0)),
                pl.BlockSpec((Cout, 1), lambda n, b: (0, 0)),
            ],
            out_specs=pl.BlockSpec((None, Cout, RB, OW),
                                   lambda n, b: (n, 0, b, 0)),
            scratch_shapes=[pltpu.VMEM((KH * KW * Cin_p, RB * Wp), cdt)],
        ),
        compiler_params=pltpu.CompilerParams(
            dimension_semantics=("parallel", "parallel"),
            vmem_limit_bytes=vmem_limit,
        ),
    )(xb, w1, s1, w2, s2)

    if OH_pad != OH:
        out = out[:, :, :OH, :]
    return out


# ----------------------------------------------------------------------------
# Demo / self-check
# ----------------------------------------------------------------------------
if __name__ == "__main__":
    # Conv_dw(in_planes=4, planes=8, stride=1, kernel_size=3, padding=1, bias=False)
    N, in_planes, H, W = 2, 4, 16, 16
    planes, K = 8, 3
    stride, padding, eps = 1, 1, 1e-5

    key = jax.random.PRNGKey(0)
    ks = jax.random.split(key, 11)
    x = jax.random.normal(ks[0], (N, in_planes, H, W), dtype=jnp.float32)
    w_dw = jax.random.normal(ks[1], (in_planes, in_planes, K, K), jnp.float32) * 0.1
    w_pw = jax.random.normal(ks[2], (planes, in_planes, 1, 1), jnp.float32) * 0.1
    g1 = 1.0 + 0.1 * jax.random.normal(ks[3], (in_planes,), jnp.float32)
    b1 = 0.1 * jax.random.normal(ks[4], (in_planes,), jnp.float32)
    m1 = 0.1 * jax.random.normal(ks[5], (in_planes,), jnp.float32)
    v1 = jnp.abs(jax.random.normal(ks[6], (in_planes,), jnp.float32)) + 0.5
    g2 = 1.0 + 0.1 * jax.random.normal(ks[7], (planes,), jnp.float32)
    b2 = 0.1 * jax.random.normal(ks[8], (planes,), jnp.float32)
    m2 = 0.1 * jax.random.normal(ks[9], (planes,), jnp.float32)
    v2 = jnp.abs(jax.random.normal(ks[10], (planes,), jnp.float32)) + 0.5
    bn1 = (g1, b1, m1, v1)
    bn2 = (g2, b2, m2, v2)

    # band_rows=8 -> 2 row-bands, so the demo exercises the halo tiling and the
    # 2-D parallel grid (N=2, nb=2).
    fn = jax.jit(functools.partial(conv_dw_forward, stride=stride,
                                   padding=padding, eps=eps, band_rows=8))
    out = jax.block_until_ready(fn(x, w_dw, w_pw, bn1, bn2))

    # Pure-JAX reference (lax conv + BN(running stats) + ReLU, twice).
    def _bn(y, g, b, m, v):
        return (y - m.reshape(1, -1, 1, 1)) / jnp.sqrt(v.reshape(1, -1, 1, 1) + eps) \
               * g.reshape(1, -1, 1, 1) + b.reshape(1, -1, 1, 1)

    c1 = jax.lax.conv_general_dilated(
        x, w_dw, (stride, stride), [(padding, padding), (padding, padding)],
        dimension_numbers=("NCHW", "OIHW", "NCHW"))
    h = jnp.maximum(_bn(c1, g1, b1, m1, v1), 0.0)
    c2 = jax.lax.conv_general_dilated(
        h, w_pw, (1, 1), [(0, 0), (0, 0)],
        dimension_numbers=("NCHW", "OIHW", "NCHW"))
    ref = jnp.maximum(_bn(c2, g2, b2, m2, v2), 0.0)

    OH = (H + 2 * padding - K) // stride + 1
    OW = (W + 2 * padding - K) // stride + 1
    assert out.shape == (N, planes, OH, OW), out.shape
    err = float(jnp.max(jnp.abs(out - ref)))
    assert jnp.allclose(out, ref, atol=1e-4, rtol=1e-4), err

    # Native bf16 MXU path: bf16 activations AND weights, f32 accumulation.
    fn_bf16 = jax.jit(functools.partial(conv_dw_forward, stride=stride,
                                        padding=padding, eps=eps, band_rows=8,
                                        compute_dtype=jnp.bfloat16))
    out_bf16 = jax.block_until_ready(fn_bf16(x, w_dw, w_pw, bn1, bn2))
    err_bf16 = float(jnp.max(jnp.abs(out_bf16 - ref)))
    assert jnp.allclose(out_bf16, ref, atol=1.5e-1, rtol=1.5e-1), err_bf16

    print("KERNEL_OK")
</pallas_src>

<mosaic_0001>
module attributes {stable_mosaic.version = 11 : i64} {
  func.func @_conv_dw_kernel(%arg0: i32, %arg1: i32, %arg2: memref<1x1x8x198xf32, #tpu.memory_space<vmem>>, %arg3: memref<8x72xf32, #tpu.memory_space<vmem>>, %arg4: memref<8x1xf32, #tpu.memory_space<vmem>>, %arg5: memref<8x8xf32, #tpu.memory_space<vmem>>, %arg6: memref<8x1xf32, #tpu.memory_space<vmem>>, %arg7: memref<1x8x8x16xf32, #tpu.memory_space<vmem>>, %arg8: memref<72x144xf32, #tpu.memory_space<vmem>>) attributes {dimension_semantics = [#tpu.dimension_semantics<parallel>, #tpu.dimension_semantics<parallel>], iteration_bounds = array<i64: 2, 2>, scalar_prefetch = 0 : i64, scratch_operands = 1 : i64, tpu.core_type = #tpu.core_type<tc>, window_params = [{transform_indices = @transform_0, window_bounds = array<i64: 1, 1, 8, 198>}, {pipeline_mode = #tpu.pipeline_mode<synchronous>, transform_indices = @transform_1, window_bounds = array<i64: 8, 72>}, {pipeline_mode = #tpu.pipeline_mode<synchronous>, transform_indices = @transform_2, window_bounds = array<i64: 8, 1>}, {pipeline_mode = #tpu.pipeline_mode<synchronous>, transform_indices = @transform_3, window_bounds = array<i64: 8, 8>}, {pipeline_mode = #tpu.pipeline_mode<synchronous>, transform_indices = @transform_4, window_bounds = array<i64: 8, 1>}, {transform_indices = @transform_5, window_bounds = array<i64: 1, 8, 8, 16>}]} {
    %c0 = arith.constant 0 : index
    %c0_0 = arith.constant 0 : index
    %c0_1 = arith.constant 0 : index
    %c0_2 = arith.constant 0 : index
    %0 = vector.load %arg2[%c0, %c0_0, %c0_1, %c0_2] : memref<1x1x8x198xf32, #tpu.memory_space<vmem>>, vector<1x1x8x144xf32>
    %1 = vector.shape_cast %0 : vector<1x1x8x144xf32> to vector<8x144xf32>
    %c0_3 = arith.constant 0 : index
    %c0_4 = arith.constant 0 : index
    %2 = vector.load %arg8[%c0_3, %c0_4] : memref<72x144xf32, #tpu.memory_space<vmem>>, vector<8x144xf32>
    tpu.vector_store %arg8[%c0_3, %c0_4], %1 {strides = array<i32>} : memref<72x144xf32, #tpu.memory_space<vmem>>, vector<8x144xf32>,
    %c0_5 = arith.constant 0 : index
    %c0_6 = arith.constant 0 : index
    %c0_7 = arith.constant 0 : index
    %c1 = arith.constant 1 : index
    %3 = vector.load %arg2[%c0_5, %c0_6, %c0_7, %c1] : memref<1x1x8x198xf32, #tpu.memory_space<vmem>>, vector<1x1x8x144xf32>
    %4 = vector.shape_cast %3 : vector<1x1x8x144xf32> to vector<8x144xf32>
    %c8 = arith.constant 8 : index
    %c0_8 = arith.constant 0 : index
    %5 = vector.load %arg8[%c8, %c0_8] : memref<72x144xf32, #tpu.memory_space<vmem>>, vector<8x144xf32>
    tpu.vector_store %arg8[%c8, %c0_8], %4 {strides = array<i32>} : memref<72x144xf32, #tpu.memory_space<vmem>>, vector<8x144xf32>,
    %c0_9 = arith.constant 0 : index
    %c0_10 = arith.constant 0 : index
    %c0_11 = arith.constant 0 : index
    %c2 = arith.constant 2 : index
    %6 = vector.load %arg2[%c0_9, %c0_10, %c0_11, %c2] : memref<1x1x8x198xf32, #tpu.memory_space<vmem>>, vector<1x1x8x144xf32>
    %7 = vector.shape_cast %6 : vector<1x1x8x144xf32> to vector<8x144xf32>
    %c16 = arith.constant 16 : index
    %c0_12 = arith.constant 0 : index
    %8 = vector.load %arg8[%c16, %c0_12] : memref<72x144xf32, #tpu.memory_space<vmem>>, vector<8x144xf32>
    tpu.vector_store %arg8[%c16, %c0_12], %7 {strides = array<i32>} : memref<72x144xf32, #tpu.memory_space<vmem>>, vector<8x144xf32>,
    %c0_13 = arith.constant 0 : index
    %c0_14 = arith.constant 0 : index
    %c0_15 = arith.constant 0 : index
    %c18 = arith.constant 18 : index
    %9 = vector.load %arg2[%c0_13, %c0_14, %c0_15, %c18] : memref<1x1x8x198xf32, #tpu.memory_space<vmem>>, vector<1x1x8x144xf32>
    %10 = vector.shape_cast %9 : vector<1x1x8x144xf32> to vector<8x144xf32>
    %c24 = arith.constant 24 : index
    %c0_16 = arith.constant 0 : index
    %11 = vector.load %arg8[%c24, %c0_16] : memref<72x144xf32, #tpu.memory_space<vmem>>, vector<8x144xf32>
    tpu.vector_store %arg8[%c24, %c0_16], %10 {strides = array<i32>} : memref<72x144xf32, #tpu.memory_space<vmem>>, vector<8x144xf32>,
    %c0_17 = arith.constant 0 : index
    %c0_18 = arith.constant 0 : index
    %c0_19 = arith.constant 0 : index
    %c19 = arith.constant 19 : index
    %12 = vector.load %arg2[%c0_17, %c0_18, %c0_19, %c19] : memref<1x1x8x198xf32, #tpu.memory_space<vmem>>, vector<1x1x8x144xf32>
    %13 = vector.shape_cast %12 : vector<1x1x8x144xf32> to vector<8x144xf32>
    %c32 = arith.constant 32 : index
    %c0_20 = arith.constant 0 : index
    %14 = vector.load %arg8[%c32, %c0_20] : memref<72x144xf32, #tpu.memory_space<vmem>>, vector<8x144xf32>
    tpu.vector_store %arg8[%c32, %c0_20], %13 {strides = array<i32>} : memref<72x144xf32, #tpu.memory_space<vmem>>, vector<8x144xf32>,
    %c0_21 = arith.constant 0 : index
    %c0_22 = arith.constant 0 : index
    %c0_23 = arith.constant 0 : index
    %c20 = arith.constant 20 : index
    %15 = vector.load %arg2[%c0_21, %c0_22, %c0_23, %c20] : memref<1x1x8x198xf32, #tpu.memory_space<vmem>>, vector<1x1x8x144xf32>
    %16 = vector.shape_cast %15 : vector<1x1x8x144xf32> to vector<8x144xf32>
    %c40 = arith.constant 40 : index
    %c0_24 = arith.constant 0 : index
    %17 = vector.load %arg8[%c40, %c0_24] : memref<72x144xf32, #tpu.memory_space<vmem>>, vector<8x144xf32>
    tpu.vector_store %arg8[%c40, %c0_24], %16 {strides = array<i32>} : memref<72x144xf32, #tpu.memory_space<vmem>>, vector<8x144xf32>,
    %c0_25 = arith.constant 0 : index
    %c0_26 = arith.constant 0 : index
    %c0_27 = arith.constant 0 : index
    %c36 = arith.constant 36 : index
    %18 = vector.load %arg2[%c0_25, %c0_26, %c0_27, %c36] : memref<1x1x8x198xf32, #tpu.memory_space<vmem>>, vector<1x1x8x144xf32>
    %19 = vector.shape_cast %18 : vector<1x1x8x144xf32> to vector<8x144xf32>
    %c48 = arith.constant 48 : index
    %c0_28 = arith.constant 0 : index
    %20 = vector.load %arg8[%c48, %c0_28] : memref<72x144xf32, #tpu.memory_space<vmem>>, vector<8x144xf32>
    tpu.vector_store %arg8[%c48, %c0_28], %19 {strides = array<i32>} : memref<72x144xf32, #tpu.memory_space<vmem>>, vector<8x144xf32>,
    %c0_29 = arith.constant 0 : index
    %c0_30 = arith.constant 0 : index
    %c0_31 = arith.constant 0 : index
    %c37 = arith.constant 37 : index
    %21 = vector.load %arg2[%c0_29, %c0_30, %c0_31, %c37] : memref<1x1x8x198xf32, #tpu.memory_space<vmem>>, vector<1x1x8x144xf32>
    %22 = vector.shape_cast %21 : vector<1x1x8x144xf32> to vector<8x144xf32>
    %c56 = arith.constant 56 : index
    %c0_32 = arith.constant 0 : index
    %23 = vector.load %arg8[%c56, %c0_32] : memref<72x144xf32, #tpu.memory_space<vmem>>, vector<8x144xf32>
    tpu.vector_store %arg8[%c56, %c0_32], %22 {strides = array<i32>} : memref<72x144xf32, #tpu.memory_space<vmem>>, vector<8x144xf32>,
    %c0_33 = arith.constant 0 : index
    %c0_34 = arith.constant 0 : index
    %c0_35 = arith.constant 0 : index
    %c38 = arith.constant 38 : index
    %24 = vector.load %arg2[%c0_33, %c0_34, %c0_35, %c38] : memref<1x1x8x198xf32, #tpu.memory_space<vmem>>, vector<1x1x8x144xf32>
    %25 = vector.shape_cast %24 : vector<1x1x8x144xf32> to vector<8x144xf32>
    %c64 = arith.constant 64 : index
    %c0_36 = arith.constant 0 : index
    %26 = vector.load %arg8[%c64, %c0_36] : memref<72x144xf32, #tpu.memory_space<vmem>>, vector<8x144xf32>
    tpu.vector_store %arg8[%c64, %c0_36], %25 {strides = array<i32>} : memref<72x144xf32, #tpu.memory_space<vmem>>, vector<8x144xf32>,
    %c0_37 = arith.constant 0 : index
    %c0_38 = arith.constant 0 : index
    %27 = vector.load %arg3[%c0_37, %c0_38] : memref<8x72xf32, #tpu.memory_space<vmem>>, vector<8x72xf32>
    %c0_39 = arith.constant 0 : index
    %c0_40 = arith.constant 0 : index
    %28 = vector.load %arg8[%c0_39, %c0_40] : memref<72x144xf32, #tpu.memory_space<vmem>>, vector<72x144xf32>
    %cst = arith.constant dense<0.000000e+00> : vector<8x144xf32>
    %29 = tpu.matmul %27, %28, %cst {dimension_numbers = #tpu.dot_dimension_numbers<[1], [0], [0], [1], [0, 0, 1, 1], [], []>} : vector<8x72xf32>, vector<72x144xf32>, vector<8x144xf32> -> vector<8x144xf32>
    %c0_41 = arith.constant 0 : index
    %c0_42 = arith.constant 0 : index
    %30 = vector.load %arg4[%c0_41, %c0_42] : memref<8x1xf32, #tpu.memory_space<vmem>>, vector<8x1xf32>
    %31 = vector.broadcast %30 : vector<8x1xf32> to vector<8x144xf32>
    %32 = arith.addf %29, %31 : vector<8x144xf32>
    %cst_43 = arith.constant 0.000000e+00 : f32
    %33 = vector.broadcast %cst_43 : f32 to vector<8x144xf32>
    %34 = arith.maximumf %32, %33 : vector<8x144xf32>
    %c0_44 = arith.constant 0 : index
    %c0_45 = arith.constant 0 : index
    %35 = vector.load %arg5[%c0_44, %c0_45] : memref<8x8xf32, #tpu.memory_space<vmem>>, vector<8x8xf32>
    %cst_46 = arith.constant dense<0.000000e+00> : vector<8x144xf32>
    %36 = tpu.matmul %35, %34, %cst_46 {dimension_numbers = #tpu.dot_dimension_numbers<[1], [0], [0], [1], [0, 0, 1, 1], [], []>} : vector<8x8xf32>, vector<8x144xf32>, vector<8x144xf32> -> vector<8x144xf32>
    %c0_47 = arith.constant 0 : index
    %c0_48 = arith.constant 0 : index
    %37 = vector.load %arg6[%c0_47, %c0_48] : memref<8x1xf32, #tpu.memory_space<vmem>>, vector<8x1xf32>
    %38 = vector.broadcast %37 : vector<8x1xf32> to vector<8x144xf32>
    %39 = arith.addf %36, %38 : vector<8x144xf32>
    %cst_49 = arith.constant 0.000000e+00 : f32
    %40 = vector.broadcast %cst_49 : f32 to vector<8x144xf32>
    %41 = arith.maximumf %39, %40 : vector<8x144xf32>
    %42 = vector.extract_strided_slice %41 {offsets = [0, 0], sizes = [8, 16], strides = [1, 1]} : vector<8x144xf32> to vector<8x16xf32>
    %c0_50 = arith.constant 0 : index
    %c0_51 = arith.constant 0 : index
    %c0_52 = arith.constant 0 : index
    %c0_53 = arith.constant 0 : index
    %43 = vector.load %arg7[%c0_50, %c0_51, %c0_52, %c0_53] : memref<1x8x8x16xf32, #tpu.memory_space<vmem>>, vector<1x8x1x16xf32>
    %44 = vector.shape_cast %43 : vector<1x8x1x16xf32> to vector<8x16xf32>
    %45 = vector.shape_cast %42 : vector<8x16xf32> to vector<1x8x1x16xf32>
    tpu.vector_store %arg7[%c0_50, %c0_51, %c0_52, %c0_53], %45 {strides = array<i32>} : memref<1x8x8x16xf32, #tpu.memory_space<vmem>>, vector<1x8x1x16xf32>,
    %46 = vector.extract_strided_slice %41 {offsets = [0, 18], sizes = [8, 16], strides = [1, 1]} : vector<8x144xf32> to vector<8x16xf32>
    %c0_54 = arith.constant 0 : index
    %c0_55 = arith.constant 0 : index
    %c1_56 = arith.constant 1 : index
    %c0_57 = arith.constant 0 : index
    %47 = vector.load %arg7[%c0_54, %c0_55, %c1_56, %c0_57] : memref<1x8x8x16xf32, #tpu.memory_space<vmem>>, vector<1x8x1x16xf32>
    %48 = vector.shape_cast %47 : vector<1x8x1x16xf32> to vector<8x16xf32>
    %49 = vector.shape_cast %46 : vector<8x16xf32> to vector<1x8x1x16xf32>
    tpu.vector_store %arg7[%c0_54, %c0_55, %c1_56, %c0_57], %49 {strides = array<i32>} : memref<1x8x8x16xf32, #tpu.memory_space<vmem>>, vector<1x8x1x16xf32>,
    %50 = vector.extract_strided_slice %41 {offsets = [0, 36], sizes = [8, 16], strides = [1, 1]} : vector<8x144xf32> to vector<8x16xf32>
    %c0_58 = arith.constant 0 : index
    %c0_59 = arith.constant 0 : index
    %c2_60 = arith.constant 2 : index
    %c0_61 = arith.constant 0 : index
    %51 = vector.load %arg7[%c0_58, %c0_59, %c2_60, %c0_61] : memref<1x8x8x16xf32, #tpu.memory_space<vmem>>, vector<1x8x1x16xf32>
    %52 = vector.shape_cast %51 : vector<1x8x1x16xf32> to vector<8x16xf32>
    %53 = vector.shape_cast %50 : vector<8x16xf32> to vector<1x8x1x16xf32>
    tpu.vector_store %arg7[%c0_58, %c0_59, %c2_60, %c0_61], %53 {strides = array<i32>} : memref<1x8x8x16xf32, #tpu.memory_space<vmem>>, vector<1x8x1x16xf32>,
    %54 = vector.extract_strided_slice %41 {offsets = [0, 54], sizes = [8, 16], strides = [1, 1]} : vector<8x144xf32> to vector<8x16xf32>
    %c0_62 = arith.constant 0 : index
    %c0_63 = arith.constant 0 : index
    %c3 = arith.constant 3 : index
    %c0_64 = arith.constant 0 : index
    %55 = vector.load %arg7[%c0_62, %c0_63, %c3, %c0_64] : memref<1x8x8x16xf32, #tpu.memory_space<vmem>>, vector<1x8x1x16xf32>
    %56 = vector.shape_cast %55 : vector<1x8x1x16xf32> to vector<8x16xf32>
    %57 = vector.shape_cast %54 : vector<8x16xf32> to vector<1x8x1x16xf32>
    tpu.vector_store %arg7[%c0_62, %c0_63, %c3, %c0_64], %57 {strides = array<i32>} : memref<1x8x8x16xf32, #tpu.memory_space<vmem>>, vector<1x8x1x16xf32>,
    %58 = vector.extract_strided_slice %41 {offsets = [0, 72], sizes = [8, 16], strides = [1, 1]} : vector<8x144xf32> to vector<8x16xf32>
    %c0_65 = arith.constant 0 : index
    %c0_66 = arith.constant 0 : index
    %c4 = arith.constant 4 : index
    %c0_67 = arith.constant 0 : index
    %59 = vector.load %arg7[%c0_65, %c0_66, %c4, %c0_67] : memref<1x8x8x16xf32, #tpu.memory_space<vmem>>, vector<1x8x1x16xf32>
    %60 = vector.shape_cast %59 : vector<1x8x1x16xf32> to vector<8x16xf32>
    %61 = vector.shape_cast %58 : vector<8x16xf32> to vector<1x8x1x16xf32>
    tpu.vector_store %arg7[%c0_65, %c0_66, %c4, %c0_67], %61 {strides = array<i32>} : memref<1x8x8x16xf32, #tpu.memory_space<vmem>>, vector<1x8x1x16xf32>,
    %62 = vector.extract_strided_slice %41 {offsets = [0, 90], sizes = [8, 16], strides = [1, 1]} : vector<8x144xf32> to vector<8x16xf32>
    %c0_68 = arith.constant 0 : index
    %c0_69 = arith.constant 0 : index
    %c5 = arith.constant 5 : index
    %c0_70 = arith.constant 0 : index
    %63 = vector.load %arg7[%c0_68, %c0_69, %c5, %c0_70] : memref<1x8x8x16xf32, #tpu.memory_space<vmem>>, vector<1x8x1x16xf32>
    %64 = vector.shape_cast %63 : vector<1x8x1x16xf32> to vector<8x16xf32>
    %65 = vector.shape_cast %62 : vector<8x16xf32> to vector<1x8x1x16xf32>
    tpu.vector_store %arg7[%c0_68, %c0_69, %c5, %c0_70], %65 {strides = array<i32>} : memref<1x8x8x16xf32, #tpu.memory_space<vmem>>, vector<1x8x1x16xf32>,
    %66 = vector.extract_strided_slice %41 {offsets = [0, 108], sizes = [8, 16], strides = [1, 1]} : vector<8x144xf32> to vector<8x16xf32>
    %c0_71 = arith.constant 0 : index
    %c0_72 = arith.constant 0 : index
    %c6 = arith.constant 6 : index
    %c0_73 = arith.constant 0 : index
    %67 = vector.load %arg7[%c0_71, %c0_72, %c6, %c0_73] : memref<1x8x8x16xf32, #tpu.memory_space<vmem>>, vector<1x8x1x16xf32>
    %68 = vector.shape_cast %67 : vector<1x8x1x16xf32> to vector<8x16xf32>
    %69 = vector.shape_cast %66 : vector<8x16xf32> to vector<1x8x1x16xf32>
    tpu.vector_store %arg7[%c0_71, %c0_72, %c6, %c0_73], %69 {strides = array<i32>} : memref<1x8x8x16xf32, #tpu.memory_space<vmem>>, vector<1x8x1x16xf32>,
    %70 = vector.extract_strided_slice %41 {offsets = [0, 126], sizes = [8, 16], strides = [1, 1]} : vector<8x144xf32> to vector<8x16xf32>
    %c0_74 = arith.constant 0 : index
    %c0_75 = arith.constant 0 : index
    %c7 = arith.constant 7 : index
    %c0_76 = arith.constant 0 : index
    %71 = vector.load %arg7[%c0_74, %c0_75, %c7, %c0_76] : memref<1x8x8x16xf32, #tpu.memory_space<vmem>>, vector<1x8x1x16xf32>
    %72 = vector.shape_cast %71 : vector<1x8x1x16xf32> to vector<8x16xf32>
    %73 = vector.shape_cast %70 : vector<8x16xf32> to vector<1x8x1x16xf32>
    tpu.vector_store %arg7[%c0_74, %c0_75, %c7, %c0_76], %73 {strides = array<i32>} : memref<1x8x8x16xf32, #tpu.memory_space<vmem>>, vector<1x8x1x16xf32>,
    return
  }
  func.func @transform_0(%arg0: i32, %arg1: i32) -> (i32, i32, i32, i32) {
    %c0_i32 = arith.constant 0 : i32
    %c0_i32_0 = arith.constant 0 : i32
    %c0_i32_1 = arith.constant 0 : i32
    return %arg0, %arg1, %c0_i32, %c0_i32_0 : i32, i32, i32, i32
  }
  func.func @transform_1(%arg0: i32, %arg1: i32) -> (i32, i32) {
    %c0_i32 = arith.constant 0 : i32
    %c0_i32_0 = arith.constant 0 : i32
    %c0_i32_1 = arith.constant 0 : i32
    return %c0_i32, %c0_i32_0 : i32, i32
  }
  func.func @transform_2(%arg0: i32, %arg1: i32) -> (i32, i32) {
    %c0_i32 = arith.constant 0 : i32
    %c0_i32_0 = arith.constant 0 : i32
    %c0_i32_1 = arith.constant 0 : i32
    return %c0_i32, %c0_i32_0 : i32, i32
  }
  func.func @transform_3(%arg0: i32, %arg1: i32) -> (i32, i32) {
    %c0_i32 = arith.constant 0 : i32
    %c0_i32_0 = arith.constant 0 : i32
    %c0_i32_1 = arith.constant 0 : i32
    return %c0_i32, %c0_i32_0 : i32, i32
  }
  func.func @transform_4(%arg0: i32, %arg1: i32) -> (i32, i32) {
    %c0_i32 = arith.constant 0 : i32
    %c0_i32_0 = arith.constant 0 : i32
    %c0_i32_1 = arith.constant 0 : i32
    return %c0_i32, %c0_i32_0 : i32, i32
  }
  func.func @transform_5(%arg0: i32, %arg1: i32) -> (i32, i32, i32, i32) {
    %c0_i32 = arith.constant 0 : i32
    %c0_i32_0 = arith.constant 0 : i32
    %c0_i32_1 = arith.constant 0 : i32
    return %arg0, %c0_i32, %arg1, %c0_i32_0 : i32, i32, i32, i32
  }
}

</mosaic_0001>

<bundles_post_ra>
// kernel: conv_dw_forward.1
= control target key start
LH: loop header
LB: loop body
LE: loop exit
PB: predicated region body
PF: predicated region fallthrough
CT: control target
= control target key end

     0   :  { %10 = vsyncpa [#allocation4], 0  ;;  %s1864_s0 = inlined_call_operand.vmem [shape: f32[2,2,8,198], index: 0, kind: input, shape index: {}]   ;;  %s1865_s1 = inlined_call_operand.vmem [shape: f32[8,72], index: 1, kind: input, shape index: {}]   ;;  %s1866_s2 = inlined_call_operand.vmem [shape: f32[8,1], index: 2, kind: input, shape index: {}]   ;;  %s1867_s3 = inlined_call_operand.vmem [shape: f32[8,8], index: 3, kind: input, shape index: {}]   ;;  %s1868_s4 = inlined_call_operand.vmem [shape: f32[8,1], index: 4, kind: input, shape index: {}]   ;;  %s1869_s5 = inlined_call_operand.hbm [shape: f32[2,8,16,16], index: 5, kind: output, shape index: {}]  }
   0x1   :  { %12 = vsyncpa [#allocation4 + $0x1], 0  ;;  %s1368_s18 = smov 0   ;;  %s1370_s19 = smov 0  }
   0x2   :  { %s1372_s20 = smov 0   ;;  %s1374_s21 = smov 0  }
   0x3   :  { %s1376_s22 = smov 0   ;;  %s1378_s23 = smov 0  }
   0x4   :  { %s1380_s24 = smov 0   ;;  %s1382_s25 = smov 0  }
   0x5 LB: > { %s1116_s26 = sadd.s32 4294967295, %s1316_s25   ;;  %s1117_s27 = sadd.s32 4294967294, %s1316_s25   ;;  %s1316_s25 = sphi %s1382_s25, %s18_s25   ;;  %s1312_s24 = sphi %s1380_s24, %s1878_s24   ;;  %s1308_s23 = sphi %s1378_s23, %s1877_s23   ;;  %s1304_s22 = sphi %s1376_s22, %s1876_s22   ;;  %s1300_s21 = sphi %s1374_s21, %s1875_s21   ;;  %s1296_s20 = sphi %s1372_s20, %s1874_s20   ;;  %s1292_s19 = sphi %s1370_s19, %s1873_s19   ;;  %s1288_s18 = sphi %s1368_s18, %s1872_s18  }
   0x6   : > { %s27_s28 = sadd.s32 1, %s1308_s23  ;;  %s30_s29 = sadd.s32 1, %s1312_s24 }
   0x7   : > { %p28_p0 = scmp.ge.s32.totalorder %s27_s28, 2  ;;  %p161_p1 = scmp.ne.s32.totalorder %s1296_s20, %s1292_s19 }
   0x8   : > { %p162_p2 = scmp.eq.s32.totalorder %s1116_s26, 3  ;;  %p167_p5 = scmp.ne.s32.totalorder %s1292_s19, %s1288_s18 }
   0x9   : > { %s1880_s28 = smov (%p28_p0, %s27_s28), 0  ;;  %s1882_s29 = smov (!%p28_p0, %s30_s29), %s1312_s24 }
   0xa   : > { %s147_s30 = ssub.s32 %s1308_s23, %s1880_s28  ;;  %p1419_p3 = por %p162_p2, %p161_p1 }
   0xb   : > { %p32_p4 = scmp.ge.s32.totalorder %s1882_s29, 2  ;;  %p168_p6 = scmp.eq.s32.totalorder %s1117_s27, 3 }
   0xc   : > { %p1120_p7 = scmp.ge.s32.totalorder %s1316_s25, 1  ;;  %p210_p9 = scmp.lt.s32.totalorder %s1316_s25, 5 }
   0xd   : > { %s1884_s29 = smov (%p32_p4, %s1882_s29), 0  ;;  %p1428_p8 = por %p168_p6, %p167_p5 }
   0xe   : > { %s146_s8 = ssub.s32 %s1312_s24, %s1884_s29  ;;  %s151_s9 = sadd.s32 1, %s1296_s20 }
   0xf   : > { %s148_s10 = sor.u32 %s147_s30, %s146_s8  ;;  %p211_p10 = pnand %p1120_p7, %p210_p9 }
  0x10   : > { %p149_p11 = scmp.eq.s32.totalorder %s148_s10, 0  ;;  %p242_p12 = scmp.lt.s32.totalorder (!%p211_p10), %s1304_s22, 1 }
  0x11   : > { %214 = sbr.rel (%p211_p10) target bundleno = 846 (0x34e), region = 40  ;;  %p244_p13 = scmp.lt.s32.totalorder (!%p211_p10), %s1300_s21, 1 }
  0x12   : > { %s1437_s11 = scalar_select %p149_p11, %s1296_s20, %s151_s9  }
  0x13   : > { %s1318_s8 = smov (!%p211_p10), 90   ;;  %s1319_s9 = smov (!%p211_p10), 91  }
  0x14   : > { %s1320_s10 = smov (!%p211_p10), 92   ;;  %s1329_s26 = smov (!%p211_p10), 74  }
  0x15   : > { %s1330_s27 = smov (!%p211_p10), 56  }
  0x16   : > { %s243_s12 = scalar_select %p242_p12, %s1304_s22, 1  ;;  %vm254_vm0 = vcmask 130048   ;;  %v1325_v2 = vmov 0.0   ;;  %v1327_v3 = vmov 0   ;;  %v387_v4 = vld [vmem:[%s1866_s2] sm:$0xff]  ;;  %vm362_vm1 = vcmask 736256  }
  0x17   : > { %s245_s13 = scalar_select %p244_p13, %s1300_s21, 1  ;;  %461 = vmatprep.mubr.f32.mxu0 %v1325_v2  ;;  %545 = vmatprep.mubr.f32.mxu1 %v1325_v2  ;;  %vm348_vm2 = vcmask 744448   ;;  %vm334_vm3 = vcmask 752640   ;;  %vm320_vm4 = vcmask 883712   ;;  %vm306_vm5 = vcmask 891904   ;;  %v368_v38 = vld [vmem:[%s1865_s1] sm:$0xff] }
  0x18   : > { %s1123_s14 = sshll.u32 %s243_s12, 2  ;;  %s1321_s12 = smov 108   ;;  %1222 = vset.pattern.permute.xlu0 %v1327_v3  ;;  %1223 = vset.pattern.permute.xlu1 %v1327_v3  ;;  %vm292_vm6 = vcmask 900096   ;;  %vm278_vm7 = vcmask 1031168   ;;  %vm264_vm8 = vcmask 1039360   ;;  %vm393_vm9 = vcmask 588800  }
  0x19   : > { %s1122_s15 = sshll.u32 %s245_s13, 1  ;;  %s1322_s13 = smov 109   ;;  %v471_v39 = vld [vmem:[%s1868_s4] sm:$0xff]  ;;  %vm477_vm10 = vcmask 64512   ;;  %v1328_v48 = vmov 1966171168   ;;  %v559_v50 = vlaneseq }
  0x1a   : > { %s248_s16 = sadd.s32 %s1123_s14, %s1122_s15  ;;  %s1323_s14 = smov 110   ;;  %v470_v47 = vld [vmem:[%s1867_s3] sm:$0xff]  ;;  %v557_v49 = vunpack.c.l.s4 %v1328_v48  ;;  %vm612_vm11 = vcmask 122880   ;;  %vm992_vm12 = vcmask 15360  }
  0x1b   : > { %s1124_s17 = sshll.u32 %s248_s16, 3  ;;  %s1324_s15 = smov 126   ;;  %v560_v52 = vshrl.u32 %v559_v50, 7 }
  0x1c   : > { %s250_s30 = scalar_lea.vmem %s1864_s0, %s1124_s17  ;;  %s1326_s16 = smov 127   ;;  %v558_v51 = vunpack.c.0.s8 %v557_v49 }
  0x1d   : > { %v1446_v0 = vld [vmem:[%s250_s30] sm:$0xff]  ;;  %v355_v1 = vld [vmem:[%s250_s30 + $0x8] sm:$0xff]  ;;  %v1488_v63 = vsub.s32 0, %v560_v52  ;;  %s1331_s30 = smov 38  }
  0x1e   : > { %358 = vrot.lane.b32.xlu0 %v1446_v0, %s1318_s8  ;;  %344 = vrot.lane.b32.xlu1 %v1446_v0, %s1319_s9  ;;  %255 = vst.msk [vmem:[#allocation2 + $0x8] sm:$0xff] %vm254_vm0, %v355_v1  ;;  %v1483_v56 = vsub.s32 %v558_v51, %v560_v52 }
  0x22   : > { %360 = vrot.lane.b32.xlu0 %v355_v1, %s1318_s8  ;;  %346 = vrot.lane.b32.xlu1 %v355_v1, %s1319_s9  ;;  %s1332_s8 = smov 20   ;;  %s1333_s9 = smov 2  }
  0x25   : > { %v370_v37 = vld [vmem:[#allocation2 + $0x8] sm:$0xff] }
  0x26   : > { %332 = vrot.lane.b32.xlu1 %v355_v1, %s1320_s10  ;;  %330 = vrot.lane.b32.xlu0 %v1446_v0, %s1320_s10 }
  0x2a   : > { %318 = vrot.lane.b32.xlu1 %v355_v1, %s1321_s12  ;;  %316 = vrot.lane.b32.xlu0 %v1446_v0, %s1321_s12 }
  0x2e   : > { %304 = vrot.lane.b32.xlu1 %v355_v1, %s1322_s13  ;;  %302 = vrot.lane.b32.xlu0 %v1446_v0, %s1322_s13 }
  0x32   : > { %290 = vrot.lane.b32.xlu1 %v355_v1, %s1323_s14  ;;  %288 = vrot.lane.b32.xlu0 %v1446_v0, %s1323_s14 }
  0x36   : > { %276 = vrot.lane.b32.xlu1 %v355_v1, %s1324_s15  ;;  %274 = vrot.lane.b32.xlu0 %v1446_v0, %s1324_s15  ;;  %s239_s15 = sand.u32 1, %s1292_s19  }
  0x3a   : > { %262 = vrot.lane.b32.xlu1 %v355_v1, %s1326_s16  ;;  %260 = vrot.lane.b32.xlu0 %v1446_v0, %s1326_s16  ;;  %s1121_s16 = sshll.u32 %s239_s15, 6 }
  0x3b   : > { %s1494_s17 = scalar_lea.vmem [#allocation3], %s1121_s16 }
  0x3c   : > { %s1032_s12 = sshll.u32 %s1494_s17, 4  ;;  %s1798_s12 = int_to_ptr.vmem [resolvable:$true] %s1032_s12 }
  0x3e   : > { %390 = vperm.xlu0 %1222, %v387_v4   ;;  %474 = vperm.xlu1 %1223, %v471_v39  }
  0x90   : > { %v359_v5 = vpop.permute.xlu0 %358  ;;  %v345_v6 = vpop.permute.xlu1 %344 }
  0x94   : > { %v361_v7 = vpop.permute.xlu0 %360  ;;  %v347_v8 = vpop.permute.xlu1 %346 }
  0x95   : > { %v363_v9 = vsel %vm362_vm1, %v359_v5, %v361_v7  ;;  %367 = vst.msk [vmem:[#allocation2 + $0x88] sm:$0xff] %vm254_vm0, %v361_v7  ;;  %v349_v10 = vsel %vm348_vm2, %v345_v6, %v347_v8  ;;  %353 = vst.msk [vmem:[#allocation2 + $0x78] sm:$0xff] %vm254_vm0, %v347_v8 }
  0x98   : > { %v333_v11 = vpop.permute.xlu1 %332  ;;  %v331_v12 = vpop.permute.xlu0 %330 }
  0x99   : > { %339 = vst.msk [vmem:[#allocation2 + $0x68] sm:$0xff] %vm254_vm0, %v333_v11  ;;  %v335_v13 = vsel %vm334_vm3, %v331_v12, %v333_v11 }
  0x9c   : > { %v319_v14 = vpop.permute.xlu1 %318  ;;  %v317_v15 = vpop.permute.xlu0 %316  ;;  %v386_v16 = vld [vmem:[#allocation2 + $0x88] sm:$0xff]  ;;  %v384_v18 = vld [vmem:[#allocation2 + $0x78] sm:$0xff] }
  0x9d   : > { %325 = vst.msk [vmem:[#allocation2 + $0x58] sm:$0xff] %vm254_vm0, %v319_v14  ;;  %v321_v17 = vsel %vm320_vm4, %v317_v15, %v319_v14  ;;  %411 = vmatprep.subr.mxu0 %v386_v16 }
  0x9e   : > { %412 = vmatpush1.msra.mxu0 %v363_v9 }
  0x9f   : > { %413 = vmatprep.subr.mxu0 %v384_v18 }
  0xa0   : > { %414 = vmatpush1.msra.mxu0 %v349_v10  ;;  %v305_v19 = vpop.permute.xlu1 %304  ;;  %v303_v20 = vpop.permute.xlu0 %302  ;;  %v382_v21 = vld [vmem:[#allocation2 + $0x68] sm:$0xff] }
  0xa1   : > { %311 = vst.msk [vmem:[#allocation2 + $0x48] sm:$0xff] %vm254_vm0, %v305_v19  ;;  %v307_v22 = vsel %vm306_vm5, %v303_v20, %v305_v19  ;;  %415 = vmatprep.subr.mxu0 %v382_v21 }
  0xa2   : > { %416 = vmatpush1.msra.mxu0 %v335_v13 }
  0xa4   : > { %v291_v23 = vpop.permute.xlu1 %290  ;;  %v289_v24 = vpop.permute.xlu0 %288  ;;  %v380_v25 = vld [vmem:[#allocation2 + $0x58] sm:$0xff] }
  0xa5   : > { %297 = vst.msk [vmem:[#allocation2 + $0x38] sm:$0xff] %vm254_vm0, %v291_v23  ;;  %v293_v26 = vsel %vm292_vm6, %v289_v24, %v291_v23  ;;  %417 = vmatprep.subr.mxu0 %v380_v25 }
  0xa6   : > { %418 = vmatpush1.msra.mxu0 %v321_v17 }
  0xa8   : > { %v277_v27 = vpop.permute.xlu1 %276  ;;  %v275_v28 = vpop.permute.xlu0 %274  ;;  %v378_v29 = vld [vmem:[#allocation2 + $0x48] sm:$0xff] }
  0xa9   : > { %283 = vst.msk [vmem:[#allocation2 + $0x28] sm:$0xff] %vm254_vm0, %v277_v27  ;;  %v279_v30 = vsel %vm278_vm7, %v275_v28, %v277_v27  ;;  %419 = vmatprep.subr.mxu0 %v378_v29  ;;  %v1552_v29 = vsub.s32 1, %v560_v52 }
  0xaa   : > { %420 = vmatpush1.msra.mxu0 %v307_v22 }
  0xac   : > { %v263_v31 = vpop.permute.xlu1 %262  ;;  %v261_v32 = vpop.permute.xlu0 %260  ;;  %v376_v33 = vld [vmem:[#allocation2 + $0x38] sm:$0xff] }
  0xad   : > { %269 = vst.msk [vmem:[#allocation2 + $0x18] sm:$0xff] %vm254_vm0, %v263_v31  ;;  %v265_v34 = vsel %vm264_vm8, %v261_v32, %v263_v31  ;;  %421 = vmatprep.subr.mxu0 %v376_v33 }
  0xae   : > { %422 = vmatpush1.msra.mxu0 %v293_v26 }
  0xb0   : > { %v374_v35 = vld [vmem:[#allocation2 + $0x28] sm:$0xff] }
  0xb1   : > { %423 = vmatprep.subr.mxu0 %v374_v35 }
  0xb2   : > { %424 = vmatpush1.msra.mxu0 %v279_v30 }
  0xb4   : > { %v372_v36 = vld [vmem:[#allocation2 + $0x18] sm:$0xff] }
  0xb5   : > { %425 = vmatprep.subr.mxu0 %v372_v36 }
  0xb6   : > { %426 = vmatpush1.msra.mxu0 %v265_v34 }
  0xb7   : > { %427 = vmatprep.subr.mxu0 %v370_v37 }
  0xb8   : > { %428 = vmatpush1.msra.mxu0 %v1446_v0 }
  0xb9   : > { %1125 = vmatmul.mubr.msk.f32.vlgmr.msra.gmra.mxu0 %vm393_vm9, %v368_v38  ;;  %v391_v40 = vpop.permute.xlu0 %390  ;;  %v475_v53 = vpop.permute.xlu1 %474 }
 0x179   : > { %v463_v41 = vpop.f32.mrf.mxu0 }
 0x17a   : > { %v464_v42 = vadd.f32 %v463_v41, %v391_v40 }
 0x17b   : > { %v465_v43 = vpop.f32.mrf.mxu0 }
 0x17c   : > { %v466_v44 = vadd.f32 %v465_v43, %v391_v40  ;;  %v468_v46 = vmax.f32 %v464_v42, 0.0 }
 0x17e   : > { %v469_v45 = vmax.f32 %v466_v44, 0.0 }
 0x180   : > { %511 = vmatprep.subr.mxu1 %v469_v45 }
 0x181   : > { %512 = vmatpush1.msra.mxu1 %v468_v46 }
 0x182   : > { %1126 = vmatmul.mubr.msk.f32.vlgmr.msra.gmra.mxu1 %vm477_vm10, %v470_v47 }
 0x242   : > { %v547_v54 = vpop.f32.mrf.mxu1 }
 0x243   : > { %v548_v55 = vadd.f32 %v547_v54, %v475_v53 }
 0x244   : > { %v549_v57 = vpop.f32.mrf.mxu1 }
 0x245   : > { %v552_v58 = vmax.f32 %v548_v55, 0.0  ;;  %v550_v59 = vadd.f32 %v549_v57, %v475_v53 }
 0x247   : > { %v555_v60 = vcombine.high %v552_v58, %v552_v58  ;;  %v562_v61 = vrot.slane %v552_v58, %v1483_v56  ;;  %v553_v62 = vmax.f32 %v550_v59, 0.0 }
 0x249   : > { %v569_v0 = vrot.slane %v555_v60, %v1483_v56  ;;  %v570_v1 = vcombine.high %v562_v61, %v562_v61  ;;  %v578_v2 = vrot.slane %v562_v61, %v1483_v56  ;;  %v846_v3 = vcombine.low %v552_v58, %v553_v62 }
 0x24a   : > { %v847_v4 = vcombine.high %v552_v58, %v553_v62 }
 0x24b   : > { %v571_v5 = vcombine.high %v569_v0, %v569_v0  ;;  %v585_v6 = vrot.slane %v569_v0, %v1483_v56  ;;  %v592_v7 = vrot.slane %v570_v1, %v1483_v56  ;;  %v600_v8 = vcombine.high %v578_v2, %v578_v2  ;;  %613 = vst.msk [vmem:[%s1494_s17] sm:$0x1] %vm612_vm11, %v578_v2 }
 0x24c   : > { %v624_v9 = vrot.slane %v578_v2, %v1488_v63  ;;  %v1500_v10 = vrot.slane %v846_v3, %v1483_v56  ;;  %v861_v11 = vrot.slane %v847_v4, %v1483_v56 }
 0x24d   : > { %v599_v12 = vrot.slane %v571_v5, %v1483_v56  ;;  %v601_v13 = vcombine.high %v585_v6, %v585_v6  ;;  %v602_v14 = vcombine.high %v592_v7, %v592_v7  ;;  %614 = vst.msk [vmem:[%s1494_s17 + $0x8] sm:$0x1] %vm612_vm11, %v592_v7  ;;  %615 = vst.msk [vmem:[%s1494_s17 + $0x10] sm:$0x1] %vm612_vm11, %v600_v8 }
 0x24e   : > { %617 = vst.msk [vmem:[%s1494_s17 + $0x20] sm:$0x1] %vm612_vm11, %v585_v6  ;;  %v628_v15 = vrot.slane %v592_v7, %v1488_v63  ;;  %v862_v16 = vcombine.high %v1500_v10, %v1500_v10  ;;  %v863_v17 = vcombine.high %v861_v11, %v861_v11  ;;  %v1514_v18 = vrot.slane %v861_v11, %v1483_v56 }
 0x24f   : > { %653 = vrot.lane.b32.xlu1 %v624_v9, %s1323_s14  ;;  %616 = vst.msk [vmem:[%s1494_s17 + $0x18] sm:$0x1] %vm612_vm11, %v602_v14  ;;  %618 = vst.msk [vmem:[%s1494_s17 + $0x28] sm:$0x1] %vm612_vm11, %v599_v12  ;;  %v1525_v19 = vrot.slane %v601_v13, %v1488_v63  ;;  %v603_v20 = vcombine.high %v599_v12, %v599_v12  ;;  %v632_v35 = vrot.slane %v600_v8, %v1488_v63 }
 0x250   : > { %619 = vst.msk [vmem:[%s1494_s17 + $0x30] sm:$0x1] %vm612_vm11, %v601_v13  ;;  %655 = vrot.lane.b32.xlu0 %v628_v15, %s1323_s14  ;;  %v931_v21 = vrot.slane %v1514_v18, %v1488_v63  ;;  %v1530_v22 = vrot.slane %v862_v16, %v1483_v56  ;;  %v1539_v24 = vrot.slane %v863_v17, %v1483_v56 }
 0x251   : > { %v1534_v23 = vrot.slane %v603_v20, %v1488_v63  ;;  %620 = vst.msk [vmem:[%s1494_s17 + $0x38] sm:$0x1] %vm612_vm11, %v603_v20  ;;  %v1543_v25 = vcombine.high %v1514_v18, %v1514_v18  ;;  %v636_v36 = vrot.slane %v602_v14, %v1488_v63  ;;  %v640_v37 = vrot.slane %v585_v6, %v1488_v63 }
 0x252   : > { %v907_v26 = vrot.slane %v1530_v22, %v1488_v63  ;;  %v939_v27 = vrot.slane %v1539_v24, %v1488_v63  ;;  %v1556_v30 = vcombine.high %v1530_v22, %v1530_v22  ;;  %v1560_v31 = vcombine.high %v1539_v24, %v1539_v24 }
 0x253   : > { %685 = vrot.lane.b32.xlu1 %v624_v9, %s1320_s10  ;;  %v947_v28 = vrot.slane %v1543_v25, %v1488_v63  ;;  %v644_v38 = vrot.slane %v599_v12, %v1488_v63  ;;  %v870_v39 = vrot.slane %v1500_v10, %v1483_v56  ;;  %v935_v41 = vrot.slane %v1514_v18, %v1552_v29 }
 0x254   : > { %687 = vrot.lane.b32.xlu0 %v628_v15, %s1320_s10  ;;  %v923_v32 = vrot.slane %v1556_v30, %v1488_v63  ;;  %v955_v33 = vrot.slane %v1560_v31, %v1488_v63  ;;  %v959_v34 = vrot.slane %v1560_v31, %v1552_v29  ;;  %v911_v43 = vrot.slane %v1530_v22, %v1552_v29 }
 0x255   : > { %v903_v40 = vrot.slane %v870_v39, %v1552_v29  ;;  %v899_v42 = vrot.slane %v870_v39, %v1488_v63  ;;  %v892_v44 = vcombine.high %v870_v39, %v870_v39  ;;  %v943_v47 = vrot.slane %v1539_v24, %v1552_v29 }
 0x256   : > { %v951_v48 = vrot.slane %v1543_v25, %v1552_v29  ;;  %v927_v51 = vrot.slane %v1556_v30, %v1552_v29 }
 0x257   : > { %717 = vrot.lane.b32.xlu1 %v624_v9, %s1329_s26  ;;  %v919_v45 = vrot.slane %v892_v44, %v1552_v29  ;;  %v915_v46 = vrot.slane %v892_v44, %v1488_v63 }
 0x258   : > { %719 = vrot.lane.b32.xlu0 %v628_v15, %s1329_s26 }
 0x25b   : > { %749 = vrot.lane.b32.xlu1 %v624_v9, %s1330_s27 }
 0x25c   : > { %751 = vrot.lane.b32.xlu0 %v628_v15, %s1330_s27 }
 0x25f   : > { %781 = vrot.lane.b32.xlu1 %v624_v9, %s1331_s30 }
 0x260   : > { %783 = vrot.lane.b32.xlu0 %v628_v15, %s1331_s30 }
 0x263   : > { %813 = vrot.lane.b32.xlu1 %v624_v9, %s1332_s8 }
 0x264   : > { %815 = vrot.lane.b32.xlu0 %v628_v15, %s1332_s8 }
 0x267   : > { %657 = vrot.lane.b32.xlu1 %v632_v35, %s1323_s14 }
 0x268   : > { %659 = vrot.lane.b32.xlu0 %v636_v36, %s1323_s14 }
 0x26b   : > { %661 = vrot.lane.b32.xlu1 %v640_v37, %s1323_s14 }
 0x26c   : > { %663 = vrot.lane.b32.xlu0 %v644_v38, %s1323_s14 }
 0x26f   : > { %689 = vrot.lane.b32.xlu1 %v632_v35, %s1320_s10 }
 0x270   : > { %691 = vrot.lane.b32.xlu0 %v636_v36, %s1320_s10 }
 0x273   : > { %693 = vrot.lane.b32.xlu1 %v640_v37, %s1320_s10 }
 0x274   : > { %695 = vrot.lane.b32.xlu0 %v644_v38, %s1320_s10 }
 0x277   : > { %721 = vrot.lane.b32.xlu1 %v632_v35, %s1329_s26 }
 0x278   : > { %723 = vrot.lane.b32.xlu0 %v636_v36, %s1329_s26 }
 0x27b   : > { %725 = vrot.lane.b32.xlu1 %v640_v37, %s1329_s26 }
 0x27c   : > { %727 = vrot.lane.b32.xlu0 %v644_v38, %s1329_s26 }
 0x27f   : > { %753 = vrot.lane.b32.xlu1 %v632_v35, %s1330_s27 }
 0x280   : > { %755 = vrot.lane.b32.xlu0 %v636_v36, %s1330_s27 }
 0x283   : > { %757 = vrot.lane.b32.xlu1 %v640_v37, %s1330_s27 }
 0x284   : > { %759 = vrot.lane.b32.xlu0 %v644_v38, %s1330_s27 }
 0x287   : > { %785 = vrot.lane.b32.xlu1 %v632_v35, %s1331_s30 }
 0x288   : > { %962 = vrot.lane.b32.xlu0 %v903_v40, %s1333_s9 }
 0x28b   : > { %789 = vrot.lane.b32.xlu1 %v640_v37, %s1331_s30 }
 0x28c   : > { %978 = vrot.lane.b32.xlu0 %v935_v41, %s1333_s9 }
 0x28f   : > { %817 = vrot.lane.b32.xlu1 %v632_v35, %s1332_s8 }
 0x290   : > { %787 = vrot.lane.b32.xlu0 %v636_v36, %s1331_s30 }
 0x293   : > { %821 = vrot.lane.b32.xlu1 %v640_v37, %s1332_s8 }
 0x294   : > { %791 = vrot.lane.b32.xlu0 %v644_v38, %s1331_s30 }
 0x297   : > { %665 = vrot.lane.b32.xlu1 %v1525_v19, %s1323_s14 }
 0x298   : > { %819 = vrot.lane.b32.xlu0 %v636_v36, %s1332_s8 }
 0x29b   : > { %697 = vrot.lane.b32.xlu1 %v1525_v19, %s1320_s10 }
 0x29c   : > { %823 = vrot.lane.b32.xlu0 %v644_v38, %s1332_s8 }
 0x29f   : > { %729 = vrot.lane.b32.xlu1 %v1525_v19, %s1329_s26 }
 0x2a0   : > { %667 = vrot.lane.b32.xlu0 %v1534_v23, %s1323_s14 }
 0x2a3   : > { %761 = vrot.lane.b32.xlu1 %v1525_v19, %s1330_s27 }
 0x2a4   : > { %699 = vrot.lane.b32.xlu0 %v1534_v23, %s1320_s10  ;;  %s1128_s10 = sshll.u32 %s1304_s22, 4 }
 0x2a5   : > { %s1029_s14 = sadd.s32 %s1300_s21, %s1128_s10 }
 0x2a6   : > { %s1129_s13 = sshll.u32 %s1029_s14, 7 }
 0x2a7   : > { %960 = vrot.lane.b32.xlu1 %v899_v42, %s1333_s9  ;;  %s1805_s16 = scalar_lea.hbm %s1869_s5, %s1129_s13 }
 0x2a8   : > { %731 = vrot.lane.b32.xlu0 %v1534_v23, %s1329_s26  ;;  %s1813_s26 = scalar_lea.sflag [#allocation4], %s239_s15 }
 0x2ab   : > { %976 = vrot.lane.b32.xlu1 %v931_v21, %s1333_s9 }
 0x2ac   : > { %763 = vrot.lane.b32.xlu0 %v1534_v23, %s1330_s27  ;;  %s1224_s27 = scalar_lea.vmem %s1798_s12, 1024 }
 0x2ad   : > { %p1225_p0 = scmp.ne.s32.totalorder %s1798_s12, %s1224_s27 }
 0x2af   : > { %793 = vrot.lane.b32.xlu1 %v1525_v19, %s1331_s30  ;;  %p1226_p1 = pnand %p1225_p0, %p1419_p3 }
 0x2b0   : > { %966 = vrot.lane.b32.xlu0 %v911_v43, %s1333_s9 }
 0x2b1   : > { %p1227_p2 = pneg %p1226_p1 }
 0x2b3   : > { %964 = vrot.lane.b32.xlu1 %v907_v26, %s1333_s9 }
 0x2b4   : > { %970 = vrot.lane.b32.xlu0 %v919_v45, %s1333_s9 }
 0x2b7   : > { %968 = vrot.lane.b32.xlu1 %v915_v46, %s1333_s9 }
 0x2b8   : > { %982 = vrot.lane.b32.xlu0 %v943_v47, %s1333_s9 }
 0x2bb   : > { %980 = vrot.lane.b32.xlu1 %v939_v27, %s1333_s9 }
 0x2bc   : > { %986 = vrot.lane.b32.xlu0 %v951_v48, %s1333_s9 }
 0x2bf   : > { %984 = vrot.lane.b32.xlu1 %v947_v28, %s1333_s9 }
 0x2c0   : > { %795 = vrot.lane.b32.xlu0 %v1534_v23, %s1331_s30  ;;  %s1334_s30 = smov [#allocation3]  }
 0x2c1   : > { %v654_v49 = vpop.permute.xlu1 %653 }
 0x2c2   : > { %677 = vst.msk [vmem:[%s1494_s17 + $0x1] sm:$0x1] %vm612_vm11, %v654_v49  ;;  %v656_v50 = vpop.permute.xlu0 %655 }
 0x2c3   : > { %678 = vst.msk [vmem:[%s1494_s17 + $0x9] sm:$0x1] %vm612_vm11, %v656_v50  ;;  %972 = vrot.lane.b32.xlu1 %v923_v32, %s1333_s9 }
 0x2c4   : > { %974 = vrot.lane.b32.xlu0 %v927_v51, %s1333_s9 }
 0x2c5   : > { %v686_v52 = vpop.permute.xlu1 %685 }
 0x2c6   : > { %709 = vst.msk [vmem:[%s1494_s17 + $0x2] sm:$0x1] %vm612_vm11, %v686_v52  ;;  %v688_v53 = vpop.permute.xlu0 %687 }
 0x2c7   : > { %710 = vst.msk [vmem:[%s1494_s17 + $0xa] sm:$0x1] %vm612_vm11, %v688_v53  ;;  %988 = vrot.lane.b32.xlu1 %v955_v33, %s1333_s9 }
 0x2c8   : > { %990 = vrot.lane.b32.xlu0 %v959_v34, %s1333_s9 }
 0x2c9   : > { %v718_v54 = vpop.permute.xlu1 %717 }
 0x2ca   : > { %741 = vst.msk [vmem:[%s1494_s17 + $0x3] sm:$0x1] %vm612_vm11, %v718_v54  ;;  %v720_v55 = vpop.permute.xlu0 %719 }
 0x2cb   : > { %742 = vst.msk [vmem:[%s1494_s17 + $0xb] sm:$0x1] %vm612_vm11, %v720_v55  ;;  %825 = vrot.lane.b32.xlu1 %v1525_v19, %s1332_s8 }
 0x2cc   : > { %827 = vrot.lane.b32.xlu0 %v1534_v23, %s1332_s8  ;;  %s1228_s8 = sshll.u32 %s1334_s30, 4  ;;  %s1229_s8 = int_to_ptr.vmem [resolvable:$false] %s1228_s8 }
 0x2cd   : > { %v750_v56 = vpop.permute.xlu1 %749  ;;  %s1230_s9 = scalar_lea.vmem %s1229_s8, 2048  ;;  %p1231_p4 = scmp.lt.s32.totalorder %s1798_s12, %s1229_s8 }
 0x2ce   : > { %773 = vst.msk [vmem:[%s1494_s17 + $0x4] sm:$0x1] %vm612_vm11, %v750_v56  ;;  %v752_v57 = vpop.permute.xlu0 %751  ;;  %p1232_p5 = scmp.lt.s32.totalorder %s1230_s9, %s1224_s27 }
 0x2cf   : > { %774 = vst.msk [vmem:[%s1494_s17 + $0xc] sm:$0x1] %vm612_vm11, %v752_v57 }
 0x2d0   : > { %p1233_p6 = por %p1232_p5, %p1231_p4 }
 0x2d1   : > { %v782_v58 = vpop.permute.xlu1 %781 }
 0x2d2   : > { %805 = vst.msk [vmem:[%s1494_s17 + $0x5] sm:$0x1] %vm612_vm11, %v782_v58  ;;  %v784_v59 = vpop.permute.xlu0 %783  ;;  %p1234_p7 = pnand %p1233_p6, %p1227_p2 }
 0x2d3   : > { %806 = vst.msk [vmem:[%s1494_s17 + $0xd] sm:$0x1] %vm612_vm11, %v784_v59 }
 0x2d5   : > { %v814_v60 = vpop.permute.xlu1 %813 }
 0x2d6   : > { %837 = vst.msk [vmem:[%s1494_s17 + $0x6] sm:$0x1] %vm612_vm11, %v814_v60  ;;  %v816_v61 = vpop.permute.xlu0 %815 }
 0x2d7   : > { %838 = vst.msk [vmem:[%s1494_s17 + $0xe] sm:$0x1] %vm612_vm11, %v816_v61 }
 0x2d9   : > { %v658_v62 = vpop.permute.xlu1 %657 }
 0x2da   : > { %679 = vst.msk [vmem:[%s1494_s17 + $0x11] sm:$0x1] %vm612_vm11, %v658_v62  ;;  %v660_v63 = vpop.permute.xlu0 %659 }
 0x2db   : > { %680 = vst.msk [vmem:[%s1494_s17 + $0x19] sm:$0x1] %vm612_vm11, %v660_v63 }
 0x2dd   : > { %v662_v0 = vpop.permute.xlu1 %661 }
 0x2de   : > { %681 = vst.msk [vmem:[%s1494_s17 + $0x21] sm:$0x1] %vm612_vm11, %v662_v0  ;;  %v664_v1 = vpop.permute.xlu0 %663 }
 0x2df   : > { %682 = vst.msk [vmem:[%s1494_s17 + $0x29] sm:$0x1] %vm612_vm11, %v664_v1 }
 0x2e1   : > { %v690_v2 = vpop.permute.xlu1 %689 }
 0x2e2   : > { %711 = vst.msk [vmem:[%s1494_s17 + $0x12] sm:$0x1] %vm612_vm11, %v690_v2  ;;  %v692_v3 = vpop.permute.xlu0 %691 }
 0x2e3   : > { %712 = vst.msk [vmem:[%s1494_s17 + $0x1a] sm:$0x1] %vm612_vm11, %v692_v3 }
 0x2e5   : > { %v694_v4 = vpop.permute.xlu1 %693 }
 0x2e6   : > { %713 = vst.msk [vmem:[%s1494_s17 + $0x22] sm:$0x1] %vm612_vm11, %v694_v4  ;;  %v696_v5 = vpop.permute.xlu0 %695 }
 0x2e7   : > { %714 = vst.msk [vmem:[%s1494_s17 + $0x2a] sm:$0x1] %vm612_vm11, %v696_v5 }
 0x2e9   : > { %v722_v6 = vpop.permute.xlu1 %721 }
 0x2ea   : > { %743 = vst.msk [vmem:[%s1494_s17 + $0x13] sm:$0x1] %vm612_vm11, %v722_v6  ;;  %v724_v7 = vpop.permute.xlu0 %723 }
 0x2eb   : > { %744 = vst.msk [vmem:[%s1494_s17 + $0x1b] sm:$0x1] %vm612_vm11, %v724_v7 }
 0x2ed   : > { %v726_v8 = vpop.permute.xlu1 %725 }
 0x2ee   : > { %745 = vst.msk [vmem:[%s1494_s17 + $0x23] sm:$0x1] %vm612_vm11, %v726_v8  ;;  %v728_v9 = vpop.permute.xlu0 %727 }
 0x2ef   : > { %746 = vst.msk [vmem:[%s1494_s17 + $0x2b] sm:$0x1] %vm612_vm11, %v728_v9 }
 0x2f1   : > { %v754_v10 = vpop.permute.xlu1 %753 }
 0x2f2   : > { %775 = vst.msk [vmem:[%s1494_s17 + $0x14] sm:$0x1] %vm612_vm11, %v754_v10  ;;  %v756_v11 = vpop.permute.xlu0 %755 }
 0x2f3   : > { %776 = vst.msk [vmem:[%s1494_s17 + $0x1c] sm:$0x1] %vm612_vm11, %v756_v11 }
 0x2f5   : > { %v758_v12 = vpop.permute.xlu1 %757 }
 0x2f6   : > { %777 = vst.msk [vmem:[%s1494_s17 + $0x24] sm:$0x1] %vm612_vm11, %v758_v12  ;;  %v760_v13 = vpop.permute.xlu0 %759 }
 0x2f7   : > { %778 = vst.msk [vmem:[%s1494_s17 + $0x2c] sm:$0x1] %vm612_vm11, %v760_v13 }
 0x2f9   : > { %v786_v14 = vpop.permute.xlu1 %785 }
 0x2fa   : > { %807 = vst.msk [vmem:[%s1494_s17 + $0x15] sm:$0x1] %vm612_vm11, %v786_v14  ;;  %v963_v15 = vpop.permute.xlu0 %962 }
 0x2fd   : > { %v790_v16 = vpop.permute.xlu1 %789 }
 0x2fe   : > { %809 = vst.msk [vmem:[%s1494_s17 + $0x25] sm:$0x1] %vm612_vm11, %v790_v16  ;;  %v979_v17 = vpop.permute.xlu0 %978 }
 0x301   : > { %v818_v18 = vpop.permute.xlu1 %817 }
 0x302   : > { %839 = vst.msk [vmem:[%s1494_s17 + $0x16] sm:$0x1] %vm612_vm11, %v818_v18  ;;  %v788_v19 = vpop.permute.xlu0 %787 }
 0x303   : > { %808 = vst.msk [vmem:[%s1494_s17 + $0x1d] sm:$0x1] %vm612_vm11, %v788_v19 }
 0x305   : > { %v822_v20 = vpop.permute.xlu1 %821 }
 0x306   : > { %841 = vst.msk [vmem:[%s1494_s17 + $0x26] sm:$0x1] %vm612_vm11, %v822_v20  ;;  %v792_v21 = vpop.permute.xlu0 %791 }
 0x307   : > { %810 = vst.msk [vmem:[%s1494_s17 + $0x2d] sm:$0x1] %vm612_vm11, %v792_v21 }
 0x309   : > { %v666_v22 = vpop.permute.xlu1 %665 }
 0x30a   : > { %683 = vst.msk [vmem:[%s1494_s17 + $0x31] sm:$0x1] %vm612_vm11, %v666_v22  ;;  %v820_v23 = vpop.permute.xlu0 %819 }
 0x30b   : > { %840 = vst.msk [vmem:[%s1494_s17 + $0x1e] sm:$0x1] %vm612_vm11, %v820_v23 }
 0x30d   : > { %v698_v24 = vpop.permute.xlu1 %697 }
 0x30e   : > { %715 = vst.msk [vmem:[%s1494_s17 + $0x32] sm:$0x1] %vm612_vm11, %v698_v24  ;;  %v824_v25 = vpop.permute.xlu0 %823 }
 0x30f   : > { %842 = vst.msk [vmem:[%s1494_s17 + $0x2e] sm:$0x1] %vm612_vm11, %v824_v25 }
 0x311   : > { %v730_v26 = vpop.permute.xlu1 %729 }
 0x312   : > { %747 = vst.msk [vmem:[%s1494_s17 + $0x33] sm:$0x1] %vm612_vm11, %v730_v26  ;;  %v668_v27 = vpop.permute.xlu0 %667 }
 0x313   : > { %684 = vst.msk [vmem:[%s1494_s17 + $0x39] sm:$0x1] %vm612_vm11, %v668_v27 }
 0x315   : > { %v762_v28 = vpop.permute.xlu1 %761 }
 0x316   : > { %779 = vst.msk [vmem:[%s1494_s17 + $0x34] sm:$0x1] %vm612_vm11, %v762_v28  ;;  %v700_v29 = vpop.permute.xlu0 %699 }
 0x317   : > { %716 = vst.msk [vmem:[%s1494_s17 + $0x3a] sm:$0x1] %vm612_vm11, %v700_v29 }
 0x319   : > { %v961_v30 = vpop.permute.xlu1 %960 }
 0x31a   : > { %v993_v31 = vsel %vm992_vm12, %v961_v30, %v963_v15  ;;  %v732_v32 = vpop.permute.xlu0 %731 }
 0x31b   : > { %1009 = vst.msk [vmem:[%s1494_s17 + $0x7] sm:$0x1] %vm612_vm11, %v993_v31  ;;  %748 = vst.msk [vmem:[%s1494_s17 + $0x3b] sm:$0x1] %vm612_vm11, %v732_v32 }
 0x31d   : > { %v977_v33 = vpop.permute.xlu1 %976 }
 0x31e   : > { %v997_v34 = vsel %vm992_vm12, %v977_v33, %v979_v17  ;;  %v764_v35 = vpop.permute.xlu0 %763 }
 0x31f   : > { %1013 = vst.msk [vmem:[%s1494_s17 + $0x27] sm:$0x1] %vm612_vm11, %v997_v34  ;;  %780 = vst.msk [vmem:[%s1494_s17 + $0x3c] sm:$0x1] %vm612_vm11, %v764_v35 }
 0x321   : > { %v794_v36 = vpop.permute.xlu1 %793 }
 0x322   : > { %811 = vst.msk [vmem:[%s1494_s17 + $0x35] sm:$0x1] %vm612_vm11, %v794_v36  ;;  %v967_v37 = vpop.permute.xlu0 %966 }
 0x325   : > { %v965_v38 = vpop.permute.xlu1 %964 }
 0x326   : > { %v994_v39 = vsel %vm992_vm12, %v965_v38, %v967_v37  ;;  %v971_v40 = vpop.permute.xlu0 %970 }
 0x327   : > { %1010 = vst.msk [vmem:[%s1494_s17 + $0xf] sm:$0x1] %vm612_vm11, %v994_v39 }
 0x329   : > { %v969_v41 = vpop.permute.xlu1 %968 }
 0x32a   : > { %v995_v42 = vsel %vm992_vm12, %v969_v41, %v971_v40  ;;  %v983_v43 = vpop.permute.xlu0 %982 }
 0x32b   : > { %1011 = vst.msk [vmem:[%s1494_s17 + $0x17] sm:$0x1] %vm612_vm11, %v995_v42 }
 0x32d   : > { %v981_v44 = vpop.permute.xlu1 %980 }
 0x32e   : > { %v998_v45 = vsel %vm992_vm12, %v981_v44, %v983_v43  ;;  %v987_v46 = vpop.permute.xlu0 %986 }
 0x32f   : > { %1014 = vst.msk [vmem:[%s1494_s17 + $0x2f] sm:$0x1] %vm612_vm11, %v998_v45 }
 0x331   : > { %v985_v47 = vpop.permute.xlu1 %984 }
 0x332   : > { %v999_v48 = vsel %vm992_vm12, %v985_v47, %v987_v46  ;;  %v796_v49 = vpop.permute.xlu0 %795 }
 0x333   : > { %1015 = vst.msk [vmem:[%s1494_s17 + $0x37] sm:$0x1] %vm612_vm11, %v999_v48  ;;  %812 = vst.msk [vmem:[%s1494_s17 + $0x3d] sm:$0x1] %vm612_vm11, %v796_v49 }
 0x335   : > { %v973_v50 = vpop.permute.xlu1 %972 }
 0x336   : > { %v975_v51 = vpop.permute.xlu0 %974 }
 0x337   : > { %v996_v52 = vsel %vm992_vm12, %v973_v50, %v975_v51 }
 0x338   : > { %1012 = vst.msk [vmem:[%s1494_s17 + $0x1f] sm:$0x1] %vm612_vm11, %v996_v52 }
 0x339   : > { %v989_v53 = vpop.permute.xlu1 %988 }
 0x33a   : > { %v991_v54 = vpop.permute.xlu0 %990 }
 0x33b   : > { %v1000_v55 = vsel %vm992_vm12, %v989_v53, %v991_v54 }
 0x33c   : > { %1016 = vst.msk [vmem:[%s1494_s17 + $0x3f] sm:$0x1] %vm612_vm11, %v1000_v55 }
 0x33d   : > { %v826_v56 = vpop.permute.xlu1 %825 }
 0x33e   : > { %843 = vst.msk [vmem:[%s1494_s17 + $0x36] sm:$0x1] %vm612_vm11, %v826_v56  ;;  %v828_v57 = vpop.permute.xlu0 %827 }
 0x33f   : > { %844 = vst.msk [vmem:[%s1494_s17 + $0x3e] sm:$0x1] %vm612_vm11, %v828_v57 }
 0x340   : > { %1237 = shalt.err (!%p1234_p7)
}
 0x341   : > { %s1238_s15 = scalar_lea.hbm %s1805_s16, 1024  ;;  %s1242_s14 = scalar_lea.hbm %s1869_s5, 4096 }
 0x342   : > { %p1239_p9 = scmp.ne.s32.totalorder %s1805_s16, %s1238_s15  ;;  %p1243_p12 = scmp.lt.s32.totalorder %s1805_s16, %s1869_s5 }
 0x343   : > { %p1244_p13 = scmp.lt.s32.totalorder %s1242_s14, %s1238_s15 }
 0x344   : > { %p1240_p10 = pnand %p1239_p9, %p1419_p3 }
 0x345   : > { %p1245_p0 = por %p1244_p13, %p1243_p12 }
 0x346   : > { %p1241_p11 = pneg %p1240_p10 }
 0x348   : > { %p1246_p1 = pnand %p1245_p0, %p1241_p11 }
 0x34a   : > { %1249 = shalt.err (!%p1246_p1)
}
 0x34b   : > { %s1335_s21 = smov 128   ;;  %s1336_s27 = smov 256  }
 0x34c   : > { %s1337_s30 = smov 8  }
 0x34d   : > { %1132 = dma.vmem_to_hbm [thread:$0]  (%p1419_p3), %s1798_s12, 1024, %s1805_s16, %s1813_s26, %s1335_s21, %s1336_s27, %s1337_s30  }
 0x34e PF: > { %p1138_p2 = scmp.ge.s32.totalorder %s1316_s25, 2  ;;  %s1047_s8 = sand.u32 1, %s1288_s18  }
 0x34f   : > { %s1048_s9 = scalar_lea.sflag [#allocation4], %s1047_s8 }
 0x350   : > { %p1135_p4 = pnand %p1138_p2, %p1428_p8 }
 0x352   : > { %p1136_p5 = pneg %p1135_p4 }
 0x354   : > { %1283 = dma.done.wait (%p1136_p5), %s1048_s9, 1024  }
 0x355   : > { %1285 = vsyncadd (%p1136_p5), %s1048_s9, 4294966272  ;;  %s18_s25 = sadd.s32 1, %s1316_s25   ;;  %s1872_s18 = smov %s1292_s19 }
 0x356   : > { %p15_p6 = scmp.ge.s32.totalorder %s18_s25, 6   ;;  %s1873_s19 = smov %s1296_s20 }
 0x357   : > { %s1874_s20 = smov %s1437_s11  ;;  %s1875_s21 = smov %s1308_s23 }
 0x358   : > { %s1876_s22 = smov %s1312_s24  ;;  %s1877_s23 = smov %s1880_s28 }
 0x359   : > { %s1878_s24 = smov %s1884_s29  ;;  %17 = sbr.rel (!%p15_p6) target bundleno = 5 (0x5), region = 75 }
 0x35e   :  { %1053 = vsyncpa [#allocation4], 1 }
 0x35f   :  { %1055 = vsyncpa [#allocation4 + $0x1], 1 }

</bundles_post_ra>
